<compile_context>
chip_gen: v5e
topology: v5e:2x2
jax: 0.10.0
libtpu: 0.0.40
codegen_flags: <defaults>
</compile_context>

<pallas_src>
import jax
import jax.numpy as jnp
from jax.experimental import pallas as pl
from jax.experimental.pallas import tpu as pltpu

_LANE = 128      # vreg lane width
_SUBLANE = 8     # f32 sublane count


def _round_up(n, m):
    return ((n + m - 1) // m) * m


def _det_dropout_net_kernel(x_ref, mask_ref, w1_ref, b1_ref, w2_ref, b2_ref, o_ref):
    # Deterministic dropout: mask is already float and 1/keep_prob has been
    # folded into W1, so this is a single VPU multiply.
    d = x_ref[...] * mask_ref[...]
    # linear_in + ReLU (MXU matmul, f32 accumulation).
    h = jnp.dot(d, w1_ref[...], preferred_element_type=jnp.float32) + b1_ref[...]
    h = jnp.maximum(h, 0.0)
    # linear_out (MXU matmul, f32 accumulation).
    o = jnp.dot(h, w2_ref[...], preferred_element_type=jnp.float32) + b2_ref[...]
    o_ref[...] = o.astype(o_ref.dtype)


def det_dropout_network(x, mask, w1, b1, w2, b2, *, keep_prob, tile_batch=256):
    """Fused forward pass.

    x:    (B, H)  float32
    mask: (B, H)  binary dropout mask (int or float)
    w1:   (H, 2H) stored as (in_features, out_features) = linear_in.weight.T
    b1:   (1, 2H)
    w2:   (2H, H) = linear_out.weight.T
    b2:   (1, H)
    Returns (B, H) float32.
    """
    B, H = x.shape
    H2 = w1.shape[1]

    # ---- host-side prep: fold dropout scale into W1, float mask ----
    # (x*mask/keep_prob) @ W1 == (x*mask) @ (W1/keep_prob), bias unaffected.
    w1 = (w1 * jnp.float32(1.0 / keep_prob)).astype(jnp.float32)
    mask = mask.astype(x.dtype)
    # TODO(synk): for large hid_dim cast weights / dropout product to bfloat16
    # for the MXU (keep f32 accumulation) and single-buffer the resident
    # weight blocks to respect v7x's 64 MiB VMEM.

    # ---- lane-dense / sublane-aligned zero padding ----
    Hp = _round_up(H, _LANE)
    H2p = _round_up(H2, _LANE)
    Bp = _round_up(B, _SUBLANE)
    tb = min(tile_batch, Bp)              # batch rows per grid step
    Bp = _round_up(Bp, tb)

    def _pad(a, rows, cols):
        return jnp.pad(a, ((0, rows - a.shape[0]), (0, cols - a.shape[1])))

    xp = _pad(x, Bp, Hp)
    mp = _pad(mask, Bp, Hp)
    w1p = _pad(w1, Hp, H2p)
    b1p = _pad(b1, 1, H2p)
    w2p = _pad(w2, H2p, Hp)
    b2p = _pad(b2, 1, Hp)

    grid = (Bp // tb,)
    flops = 2 * Bp * Hp * H2p + 2 * Bp * H2p * Hp
    bytes_accessed = 4 * (xp.size + mp.size + w1p.size + b1p.size
                          + w2p.size + b2p.size + Bp * Hp)

    out = pl.pallas_call(
        _det_dropout_net_kernel,
        out_shape=jax.ShapeDtypeStruct((Bp, Hp), x.dtype),
        grid=grid,
        in_specs=[
            pl.BlockSpec((tb, Hp), lambda i: (i, 0)),     # x batch tile
            pl.BlockSpec((tb, Hp), lambda i: (i, 0)),     # mask batch tile
            pl.BlockSpec((Hp, H2p), lambda i: (0, 0)),    # W1 (resident)
            pl.BlockSpec((1, H2p), lambda i: (0, 0)),     # b1 (resident)
            pl.BlockSpec((H2p, Hp), lambda i: (0, 0)),    # W2 (resident)
            pl.BlockSpec((1, Hp), lambda i: (0, 0)),      # b2 (resident)
        ],
        out_specs=pl.BlockSpec((tb, Hp), lambda i: (i, 0)),
        compiler_params=pltpu.CompilerParams(
            # batch tiles are independent -> shard across v7x's 2 TensorCores
            dimension_semantics=("parallel",),
            vmem_limit_bytes=64 * 1024 * 1024,
        ),
        cost_estimate=pl.CostEstimate(
            flops=flops, transcendentals=0, bytes_accessed=bytes_accessed),
    )(xp, mp, w1p, b1p, w2p, b2p)

    return out[:B, :H]


def _init_params(key, hid_dim):
    """Deterministic PyTorch-style uniform(-1/sqrt(fan_in), 1/sqrt(fan_in))."""
    k1, k2, k3, k4 = jax.random.split(key, 4)
    bound1 = 1.0 / (hid_dim ** 0.5)
    bound2 = 1.0 / ((2 * hid_dim) ** 0.5)
    # stored as (in_features, out_features) = W^T relative to nn.Linear.weight
    w1 = jax.random.uniform(k1, (hid_dim, 2 * hid_dim), jnp.float32,
                            minval=-bound1, maxval=bound1)
    b1 = jax.random.uniform(k2, (1, 2 * hid_dim), jnp.float32,
                            minval=-bound1, maxval=bound1)
    w2 = jax.random.uniform(k3, (2 * hid_dim, hid_dim), jnp.float32,
                            minval=-bound2, maxval=bound2)
    b2 = jax.random.uniform(k4, (1, hid_dim), jnp.float32,
                            minval=-bound2, maxval=bound2)
    return w1, b1, w2, b2


if __name__ == "__main__":
    batch_size, hid_dim = 8, 32
    dropout_prob = 0.2
    keep_prob = 1.0 - dropout_prob

    key = jax.random.PRNGKey(0)
    kx, kmask, kparams = jax.random.split(key, 3)

    x = jax.random.normal(kx, (batch_size, hid_dim), jnp.float32)
    # binary dropout mask supplied externally (deterministic dropout)
    mask = jax.random.bernoulli(kmask, p=keep_prob,
                                shape=(batch_size, hid_dim)).astype(jnp.int32)
    w1, b1, w2, b2 = _init_params(kparams, hid_dim)

    out = det_dropout_network(x, mask, w1, b1, w2, b2, keep_prob=keep_prob)
    out = jax.block_until_ready(out)

    # pure-JAX reference (original, unfolded math)
    d_ref = x * mask.astype(jnp.float32) / keep_prob
    h_ref = jnp.maximum(d_ref @ w1 + b1, 0.0)
    ref = h_ref @ w2 + b2
    assert out.shape == (batch_size, hid_dim)
    assert jnp.allclose(out, ref, atol=1e-4, rtol=1e-4), \
        float(jnp.max(jnp.abs(out - ref)))

    print("KERNEL_OK")
</pallas_src>

<mosaic_0001>
module attributes {stable_mosaic.version = 11 : i64} {
  func.func @_det_dropout_net_kernel(%arg0: i32, %arg1: memref<8x128xf32, #tpu.memory_space<vmem>>, %arg2: memref<8x128xf32, #tpu.memory_space<vmem>>, %arg3: memref<128x128xf32, #tpu.memory_space<vmem>>, %arg4: memref<1x128xf32, #tpu.memory_space<vmem>>, %arg5: memref<128x128xf32, #tpu.memory_space<vmem>>, %arg6: memref<1x128xf32, #tpu.memory_space<vmem>>, %arg7: memref<8x128xf32, #tpu.memory_space<vmem>>) attributes {dimension_semantics = [#tpu.dimension_semantics<parallel>], iteration_bounds = array<i64: 1>, scalar_prefetch = 0 : i64, scratch_operands = 0 : i64, tpu.core_type = #tpu.core_type<tc>, window_params = [{transform_indices = @transform_0, window_bounds = array<i64: 8, 128>}, {transform_indices = @transform_1, window_bounds = array<i64: 8, 128>}, {pipeline_mode = #tpu.pipeline_mode<synchronous>, transform_indices = @transform_2, window_bounds = array<i64: 128, 128>}, {pipeline_mode = #tpu.pipeline_mode<synchronous>, transform_indices = @transform_3, window_bounds = array<i64: 1, 128>}, {pipeline_mode = #tpu.pipeline_mode<synchronous>, transform_indices = @transform_4, window_bounds = array<i64: 128, 128>}, {pipeline_mode = #tpu.pipeline_mode<synchronous>, transform_indices = @transform_5, window_bounds = array<i64: 1, 128>}, {transform_indices = @transform_6, window_bounds = array<i64: 8, 128>}]} {
    %c0 = arith.constant 0 : index
    %c0_0 = arith.constant 0 : index
    %0 = vector.load %arg1[%c0, %c0_0] : memref<8x128xf32, #tpu.memory_space<vmem>>, vector<8x128xf32>
    %c0_1 = arith.constant 0 : index
    %c0_2 = arith.constant 0 : index
    %1 = vector.load %arg2[%c0_1, %c0_2] : memref<8x128xf32, #tpu.memory_space<vmem>>, vector<8x128xf32>
    %2 = arith.mulf %0, %1 : vector<8x128xf32>
    %c0_3 = arith.constant 0 : index
    %c0_4 = arith.constant 0 : index
    %3 = vector.load %arg3[%c0_3, %c0_4] : memref<128x128xf32, #tpu.memory_space<vmem>>, vector<128x128xf32>
    %cst = arith.constant dense<0.000000e+00> : vector<8x128xf32>
    %4 = tpu.matmul %2, %3, %cst {dimension_numbers = #tpu.dot_dimension_numbers<[1], [0], [0], [1], [0, 0, 1, 1], [], []>} : vector<8x128xf32>, vector<128x128xf32>, vector<8x128xf32> -> vector<8x128xf32>
    %c0_5 = arith.constant 0 : index
    %c0_6 = arith.constant 0 : index
    %5 = vector.load %arg4[%c0_5, %c0_6] : memref<1x128xf32, #tpu.memory_space<vmem>>, vector<1x128xf32>
    %6 = vector.broadcast %5 : vector<1x128xf32> to vector<8x128xf32>
    %7 = arith.addf %4, %6 : vector<8x128xf32>
    %cst_7 = arith.constant 0.000000e+00 : f32
    %8 = vector.broadcast %cst_7 : f32 to vector<8x128xf32>
    %9 = arith.maximumf %7, %8 : vector<8x128xf32>
    %c0_8 = arith.constant 0 : index
    %c0_9 = arith.constant 0 : index
    %10 = vector.load %arg5[%c0_8, %c0_9] : memref<128x128xf32, #tpu.memory_space<vmem>>, vector<128x128xf32>
    %cst_10 = arith.constant dense<0.000000e+00> : vector<8x128xf32>
    %11 = tpu.matmul %9, %10, %cst_10 {dimension_numbers = #tpu.dot_dimension_numbers<[1], [0], [0], [1], [0, 0, 1, 1], [], []>} : vector<8x128xf32>, vector<128x128xf32>, vector<8x128xf32> -> vector<8x128xf32>
    %c0_11 = arith.constant 0 : index
    %c0_12 = arith.constant 0 : index
    %12 = vector.load %arg6[%c0_11, %c0_12] : memref<1x128xf32, #tpu.memory_space<vmem>>, vector<1x128xf32>
    %13 = vector.broadcast %12 : vector<1x128xf32> to vector<8x128xf32>
    %14 = arith.addf %11, %13 : vector<8x128xf32>
    %c0_13 = arith.constant 0 : index
    %c0_14 = arith.constant 0 : index
    %15 = vector.load %arg7[%c0_13, %c0_14] : memref<8x128xf32, #tpu.memory_space<vmem>>, vector<8x128xf32>
    tpu.vector_store %arg7[%c0_13, %c0_14], %14 {strides = array<i32>} : memref<8x128xf32, #tpu.memory_space<vmem>>, vector<8x128xf32>,
    return
  }
  func.func @transform_0(%arg0: i32) -> (i32, i32) {
    %c0_i32 = arith.constant 0 : i32
    %c0_i32_0 = arith.constant 0 : i32
    return %arg0, %c0_i32 : i32, i32
  }
  func.func @transform_1(%arg0: i32) -> (i32, i32) {
    %c0_i32 = arith.constant 0 : i32
    %c0_i32_0 = arith.constant 0 : i32
    return %arg0, %c0_i32 : i32, i32
  }
  func.func @transform_2(%arg0: i32) -> (i32, i32) {
    %c0_i32 = arith.constant 0 : i32
    %c0_i32_0 = arith.constant 0 : i32
    %c0_i32_1 = arith.constant 0 : i32
    return %c0_i32, %c0_i32_0 : i32, i32
  }
  func.func @transform_3(%arg0: i32) -> (i32, i32) {
    %c0_i32 = arith.constant 0 : i32
    %c0_i32_0 = arith.constant 0 : i32
    %c0_i32_1 = arith.constant 0 : i32
    return %c0_i32, %c0_i32_0 : i32, i32
  }
  func.func @transform_4(%arg0: i32) -> (i32, i32) {
    %c0_i32 = arith.constant 0 : i32
    %c0_i32_0 = arith.constant 0 : i32
    %c0_i32_1 = arith.constant 0 : i32
    return %c0_i32, %c0_i32_0 : i32, i32
  }
  func.func @transform_5(%arg0: i32) -> (i32, i32) {
    %c0_i32 = arith.constant 0 : i32
    %c0_i32_0 = arith.constant 0 : i32
    %c0_i32_1 = arith.constant 0 : i32
    return %c0_i32, %c0_i32_0 : i32, i32
  }
  func.func @transform_6(%arg0: i32) -> (i32, i32) {
    %c0_i32 = arith.constant 0 : i32
    %c0_i32_0 = arith.constant 0 : i32
    return %arg0, %c0_i32 : i32, i32
  }
}

</mosaic_0001>

<bundles_post_ra>
// kernel: tpu_custom_call.1
= control target key start
LH: loop header
LB: loop body
LE: loop exit
PB: predicated region body
PF: predicated region fallthrough
CT: control target
= control target key end

     0   :  { %11 = vsyncpa [#allocation3], 0  ;;  %s387_s0 = inlined_call_operand.hbm [shape: f32[8,128], index: 0, kind: input, shape index: {}]   ;;  %s388_s1 = inlined_call_operand.hbm [shape: f32[8,128], index: 1, kind: input, shape index: {}]   ;;  %s389_s2 = inlined_call_operand.hbm [shape: f32[128,128], index: 2, kind: input, shape index: {}]   ;;  %s390_s3 = inlined_call_operand.vmem [shape: f32[1,128], index: 3, kind: input, shape index: {}]   ;;  %s391_s4 = inlined_call_operand.hbm [shape: f32[128,128], index: 4, kind: input, shape index: {}]   ;;  %s392_s5 = inlined_call_operand.vmem [shape: f32[1,128], index: 5, kind: input, shape index: {}]   ;;  %s393_s6 = inlined_call_operand.hbm [shape: f32[8,128], index: 6, kind: output, shape index: {}]  }
   0x1   :  { %12 = vsyncpa [#allocation6], 0 }
   0x2   :  { %13 = vsyncpa [#allocation9], 0  ;;  %s31_s23 = sshll.u32 %s388_s1, 4  ;;  %s32_s23 = int_to_ptr.hbm [resolvable:$true] %s31_s23 }
   0x3   :  { %14 = vsyncpa [#allocation4], 0  ;;  %s324_s24 = smov [#allocation5]   ;;  %s20_s28 = sshll.u32 %s387_s0, 4  ;;  %s21_s28 = int_to_ptr.hbm [resolvable:$true] %s20_s28 }
   0x4   :  { %s33_s25 = sshll.u32 %s324_s24, 4  ;;  %s325_s29 = smov [#allocation2]   ;;  %s34_s25 = int_to_ptr.vmem [resolvable:$true] %s33_s25 }
   0x5   :  { %36 = dma.hbm_to_vmem [thread:$0]  %s32_s23, 128, %s34_s25, [#allocation6]  }
   0x6   :  { %s22_s30 = sshll.u32 %s325_s29, 4  ;;  %s41_s9 = sshll.u32 %s389_s2, 4  ;;  %s23_s30 = int_to_ptr.vmem [resolvable:$true] %s22_s30  ;;  %s42_s9 = int_to_ptr.hbm [resolvable:$true] %s41_s9 }
   0x7   :  { %25 = dma.hbm_to_vmem [thread:$0]  %s21_s28, 128, %s23_s30, [#allocation3]  }
   0x8   :  { %s326_s1 = smov [#allocation7]   ;;  %s56_s13 = sshll.u32 %s391_s4, 4  ;;  %s57_s13 = int_to_ptr.hbm [resolvable:$true] %s56_s13 }
   0x9   :  { %s43_s10 = sshll.u32 %s326_s1, 4  ;;  %s327_s14 = smov 128   ;;  %s44_s10 = int_to_ptr.vmem [resolvable:$true] %s43_s10 }
   0xa   :  { %s328_s0 = smov 8   ;;  %s329_s15 = smov [#allocation8]  }
   0xb   :  { %49 = dma.hbm_to_vmem [thread:$0]  %s42_s9, 2048, %s44_s10, [#allocation6], %s327_s14, %s327_s14, %s328_s0  }
   0xc   :  { %s58_s16 = sshll.u32 %s329_s15, 4  ;;  %s59_s16 = int_to_ptr.vmem [resolvable:$true] %s58_s16 }
   0xd   :  { %64 = dma.hbm_to_vmem [thread:$0]  %s57_s13, 2048, %s59_s16, [#allocation9], %s327_s14, %s327_s14, %s328_s0  }
   0xe   :  { %316 = dma.done.wait [#allocation3], 128  }
   0xf   :  { %317 = vsyncadd [#allocation3], 4294967168 }
  0x10   :  { %318 = dma.done.wait [#allocation6], 2176  }
  0x11   :  { %319 = vsyncadd [#allocation6], 4294965120 }
  0x12   :  { %320 = dma.done.wait [#allocation9], 2048  }
  0x13   :  { %321 = vsyncadd [#allocation9], 4294965248  ;;  %v101_v0 = vld [vmem:[#allocation7 + $0x78] sm:$0xff]  ;;  %v100_v1 = vld [vmem:[#allocation7 + $0x70] sm:$0xff]  ;;  %s330_s19 = smov [#allocation10]   ;;  %s175_s23 = sshll.u32 %s393_s6, 4  ;;  %s176_s23 = int_to_ptr.hbm [resolvable:$true] %s175_s23 }
  0x14   :  { %106 = vmatpush.msra.mxu0 %v101_v0  ;;  %v99_v2 = vld [vmem:[#allocation7 + $0x68] sm:$0xff]  ;;  %v98_v3 = vld [vmem:[#allocation7 + $0x60] sm:$0xff]  ;;  %v97_v4 = vld [vmem:[#allocation7 + $0x58] sm:$0xff]  ;;  %s173_s20 = sshll.u32 %s330_s19, 4  ;;  %s174_s20 = int_to_ptr.vmem [resolvable:$true] %s173_s20 }
  0x15   :  { %v142_v5 = vld [vmem:[#allocation8 + $0x78] sm:$0xff]  ;;  %v141_v6 = vld [vmem:[#allocation8 + $0x70] sm:$0xff]  ;;  %v140_v8 = vld [vmem:[#allocation8 + $0x68] sm:$0xff] }
  0x16   :  { %107 = vmatpush.msra.mxu0 %v100_v1  ;;  %147 = vmatpush.msra.mxu1 %v142_v5  ;;  %v96_v7 = vld [vmem:[#allocation7 + $0x50] sm:$0xff]  ;;  %v95_v9 = vld [vmem:[#allocation7 + $0x48] sm:$0xff]  ;;  %v139_v10 = vld [vmem:[#allocation8 + $0x60] sm:$0xff] }
  0x17   :  { %v94_v11 = vld [vmem:[#allocation7 + $0x40] sm:$0xff]  ;;  %v138_v12 = vld [vmem:[#allocation8 + $0x58] sm:$0xff]  ;;  %v137_v14 = vld [vmem:[#allocation8 + $0x50] sm:$0xff] }
  0x18   :  { %108 = vmatpush.msra.mxu0 %v99_v2  ;;  %148 = vmatpush.msra.mxu1 %v141_v6  ;;  %v93_v13 = vld [vmem:[#allocation7 + $0x38] sm:$0xff]  ;;  %v92_v15 = vld [vmem:[#allocation7 + $0x30] sm:$0xff]  ;;  %v136_v16 = vld [vmem:[#allocation8 + $0x48] sm:$0xff] }
  0x19   :  { %v91_v17 = vld [vmem:[#allocation7 + $0x28] sm:$0xff]  ;;  %v135_v18 = vld [vmem:[#allocation8 + $0x40] sm:$0xff]  ;;  %v134_v20 = vld [vmem:[#allocation8 + $0x38] sm:$0xff] }
  0x1a   :  { %109 = vmatpush.msra.mxu0 %v98_v3  ;;  %149 = vmatpush.msra.mxu1 %v140_v8  ;;  %v90_v19 = vld [vmem:[#allocation7 + $0x20] sm:$0xff]  ;;  %v89_v21 = vld [vmem:[#allocation7 + $0x18] sm:$0xff]  ;;  %v133_v22 = vld [vmem:[#allocation8 + $0x30] sm:$0xff] }
  0x1b   :  { %v88_v23 = vld [vmem:[#allocation7 + $0x10] sm:$0xff]  ;;  %v132_v24 = vld [vmem:[#allocation8 + $0x28] sm:$0xff]  ;;  %v84_v26 = vld [vmem:[#allocation5] sm:$0xff] }
  0x1c   :  { %110 = vmatpush.msra.mxu0 %v97_v4  ;;  %150 = vmatpush.msra.mxu1 %v139_v10  ;;  %v83_v25 = vld [vmem:[#allocation2] sm:$0xff]  ;;  %v87_v27 = vld [vmem:[#allocation7 + $0x8] sm:$0xff]  ;;  %v131_v28 = vld [vmem:[#allocation8 + $0x20] sm:$0xff] }
  0x1d   :  { %v86_v29 = vld [vmem:[#allocation7] sm:$0xff]  ;;  %v85_v30 = vmul.f32 %v84_v26, %v83_v25  ;;  %v130_v31 = vld [vmem:[#allocation8 + $0x18] sm:$0xff]  ;;  %v129_v32 = vld [vmem:[#allocation8 + $0x10] sm:$0xff] }
  0x1e   :  { %111 = vmatpush.msra.mxu0 %v96_v7  ;;  %151 = vmatpush.msra.mxu1 %v138_v12  ;;  %v128_v33 = vld [vmem:[#allocation8 + $0x8] sm:$0xff]  ;;  %v127_v34 = vld [vmem:[#allocation8] sm:$0xff]  ;;  %v194_v35 = vld [vmem:[%s390_s3] ss:$0 sm:$0xff] }
  0x1f   :  { %v195_v39 = vld [vmem:[%s392_s5] ss:$0 sm:$0xff] }
  0x20   :  { %112 = vmatpush.msra.mxu0 %v95_v9  ;;  %152 = vmatpush.msra.mxu1 %v137_v14 }
  0x22   :  { %113 = vmatpush.msra.mxu0 %v94_v11  ;;  %153 = vmatpush.msra.mxu1 %v136_v16 }
  0x24   :  { %114 = vmatpush.msra.mxu0 %v93_v13  ;;  %154 = vmatpush.msra.mxu1 %v135_v18 }
  0x26   :  { %115 = vmatpush.msra.mxu0 %v92_v15  ;;  %155 = vmatpush.msra.mxu1 %v134_v20 }
  0x28   :  { %116 = vmatpush.msra.mxu0 %v91_v17  ;;  %156 = vmatpush.msra.mxu1 %v133_v22 }
  0x2a   :  { %117 = vmatpush.msra.mxu0 %v90_v19  ;;  %157 = vmatpush.msra.mxu1 %v132_v24 }
  0x2c   :  { %118 = vmatpush.msra.mxu0 %v89_v21  ;;  %158 = vmatpush.msra.mxu1 %v131_v28 }
  0x2e   :  { %119 = vmatpush.msra.mxu0 %v88_v23  ;;  %159 = vmatpush.msra.mxu1 %v130_v31 }
  0x30   :  { %120 = vmatpush.msra.mxu0 %v87_v27  ;;  %160 = vmatpush.msra.mxu1 %v129_v32 }
  0x32   :  { %121 = vmatpush.msra.mxu0 %v86_v29  ;;  %161 = vmatpush.msra.mxu1 %v128_v33 }
  0x33   :  { %122 = vmatmul.f32.vlgmr.msra.gmra.mxu0 %v85_v30 }
  0x34   :  { %162 = vmatpush.msra.mxu1 %v127_v34 }
  0xb0   :  { %v123_v36 = vpop.f32.mrf.mxu0 }
  0xb1   :  { %v124_v37 = vadd.f32 %v194_v35, %v123_v36 }
  0xb3   :  { %v126_v38 = vmax.f32 %v124_v37, 0.0 }
  0xb5   :  { %163 = vmatmul.f32.vlgmr.msra.gmra.mxu1 %v126_v38 }
 0x132   :  { %v164_v40 = vpop.f32.mrf.mxu1 }
 0x133   :  { %v165_v41 = vadd.f32 %v195_v39, %v164_v40 }
 0x135   :  { %167 = vst [vmem:[#allocation10] sm:$0xff] %v165_v41 }
 0x136   :  { %178 = dma.vmem_to_hbm [thread:$0]  %s174_s20, 128, %s176_s23, [#allocation4]  }
 0x137   :  { %322 = dma.done.wait [#allocation4], 128  }
 0x138   :  { %323 = vsyncadd [#allocation4], 4294967168 }
 0x139   :  { %183 = vsyncpa [#allocation3], 1 }
 0x13a   :  { %184 = vsyncpa [#allocation6], 1 }
 0x13b   :  { %185 = vsyncpa [#allocation9], 1 }
 0x13c   :  { %186 = vsyncpa [#allocation4], 1 }

</bundles_post_ra>
